<compile_context>
chip_gen: v7x
topology: tpu7x:2x2x1
jax: 0.10.0
libtpu: 0.0.40
codegen_flags: <defaults>
</compile_context>

<pallas_src>
import jax
import jax.numpy as jnp
from jax.experimental import pallas as pl
from jax.experimental.pallas import tpu as pltpu

EPS = 1e-5
_VMEM_LIMIT = 32 * 1024 * 1024   # conservative: fine on v5e/v6e (128 MiB) and v7x (64 MiB)


def _pick_tile_l(L, max_tile=4096):
    """Largest lane-dense (multiple-of-128) divisor of L up to max_tile; else full L."""
    best = None
    t = 128
    while t <= min(L, max_tile):
        if L % t == 0:
            best = t
        t += 128
    # TODO(synk): mask tail lanes instead of falling back to a full-L tile when
    # L is large and has no multiple-of-128 divisor.
    return best if best is not None else L


# ---------------- pass 1: per-channel sum / sum-of-squares of x ----------------
def _x_stats_kernel(x_ref, sum_ref, sq_ref):
    @pl.when(jnp.logical_and(pl.program_id(0) == 0, pl.program_id(1) == 0))
    def _():
        sum_ref[...] = jnp.zeros_like(sum_ref)
        sq_ref[...] = jnp.zeros_like(sq_ref)

    x_t = x_ref[0]                                            # (Cin, TL)
    sum_ref[...] += jnp.sum(x_t, axis=1, keepdims=True)
    sq_ref[...] += jnp.sum(x_t * x_t, axis=1, keepdims=True)


# -------- pass 2: per-channel sum / sum-sq of net' = W0 @ relu(bn_0(x)) --------
# fc_0's bias is omitted on purpose: training-mode bn_1 subtracts the batch
# mean, so a constant per-channel shift cancels exactly (handled in wrapper).
def _net_stats_kernel(x_ref, a0_ref, s0_ref, w0_ref, sum_ref, sq_ref):
    @pl.when(jnp.logical_and(pl.program_id(0) == 0, pl.program_id(1) == 0))
    def _():
        sum_ref[...] = jnp.zeros_like(sum_ref)
        sq_ref[...] = jnp.zeros_like(sq_ref)

    x_t = x_ref[0]                                            # (Cin, TL)
    h0 = jnp.maximum(x_t * a0_ref[...] + s0_ref[...], 0.0)    # folded bn_0 + ReLU
    net = jnp.dot(w0_ref[...], h0, preferred_element_type=jnp.float32)
    sum_ref[...] += jnp.sum(net, axis=1, keepdims=True)
    sq_ref[...] += jnp.sum(net * net, axis=1, keepdims=True)


# ----------------------- pass 3: apply + lane-dense store -----------------------
def _apply_kernel(x_ref, c_ref, a0_ref, s0_ref, w0e_ref, s1_ref,
                  w_all_ref, bias_ref, out_ref):
    x_t = x_ref[0]                                            # (Cin, TL)
    c_t = c_ref[0]                                            # (Cd,  TL)
    # bn_0 folded into per-channel scale/shift, then ReLU.
    h0 = jnp.maximum(x_t * a0_ref[...] + s0_ref[...], 0.0)
    # fc_0 with bn_1's scale pre-folded into the weight rows; shift + ReLU.
    # (Recompute net instead of a full-N HBM round trip of it: cheaper while
    # mem-bound at these channel counts.)
    h1 = jnp.maximum(jnp.dot(w0e_ref[...], h0, preferred_element_type=jnp.float32)
                     + s1_ref[...], 0.0)
    # fc_1 + shortcut + fc_c fused into one MXU matmul over stacked channels.
    hxc = jnp.concatenate([h1, x_t, c_t], axis=0)             # (Ch+Cin+Cd, TL)
    out_ref[0] = (jnp.dot(w_all_ref[...], hxc, preferred_element_type=jnp.float32)
                  + bias_ref[...])


def resnet_block_conv1d(x, c, params, *, tile_l=None):
    """x: (B, size_in, L), c: (B, c_dim, L) -> (B, size_out, L). float32, NCL layout."""
    B, Cin, L = x.shape
    Cd = c.shape[1]
    Ch = params["w0"].shape[0]
    Cout = params["w1"].shape[0]
    N = B * L

    TL = tile_l if tile_l is not None else _pick_tile_l(L)
    assert L % TL == 0, "tile_l must divide L"
    nL = L // TL
    grid = (B, nL)

    x_spec = pl.BlockSpec((1, Cin, TL), lambda b, l: (b, 0, l))
    c_spec = pl.BlockSpec((1, Cd, TL), lambda b, l: (b, 0, l))

    def const_spec(a):  # small params: loaded once, stay resident in VMEM
        nd = a.ndim
        return pl.BlockSpec(a.shape, lambda b, l: (0,) * nd)

    def stats_spec(C):  # resident accumulator across the whole grid
        return pl.BlockSpec((C, 1), lambda b, l: (0, 0))

    stats_cp = pltpu.CompilerParams(
        dimension_semantics=("arbitrary", "arbitrary"),
        vmem_limit_bytes=_VMEM_LIMIT)
    apply_cp = pltpu.CompilerParams(
        dimension_semantics=("parallel", "parallel"),
        vmem_limit_bytes=_VMEM_LIMIT)

    # ---- pass 1: batch statistics of x (training-mode BatchNorm1d) ----
    x_sum, x_sq = pl.pallas_call(
        _x_stats_kernel,
        grid=grid,
        in_specs=[x_spec],
        out_specs=(stats_spec(Cin), stats_spec(Cin)),
        out_shape=(jax.ShapeDtypeStruct((Cin, 1), jnp.float32),
                   jax.ShapeDtypeStruct((Cin, 1), jnp.float32)),
        compiler_params=stats_cp,
        cost_estimate=pl.CostEstimate(flops=3 * N * Cin, transcendentals=0,
                                      bytes_accessed=4 * N * Cin + 8 * Cin),
    )(x)

    inv_n = 1.0 / float(N)
    mu0 = x_sum * inv_n
    # TODO(synk): E[x^2]-E[x]^2 in f32 can lose precision for very large N; switch
    # to a Welford / two-pass-per-channel scheme if that regime matters.
    var0 = jnp.maximum(x_sq * inv_n - mu0 * mu0, 0.0)          # biased variance
    a0 = params["g0"] * jax.lax.rsqrt(var0 + EPS)              # (Cin, 1)
    s0 = params["be0"] - mu0 * a0

    # ---- pass 2: batch statistics of net' = W0 @ relu(bn_0(x)) (no bias) ----
    net_sum, net_sq = pl.pallas_call(
        _net_stats_kernel,
        grid=grid,
        in_specs=[x_spec, const_spec(a0), const_spec(s0), const_spec(params["w0"])],
        out_specs=(stats_spec(Ch), stats_spec(Ch)),
        out_shape=(jax.ShapeDtypeStruct((Ch, 1), jnp.float32),
                   jax.ShapeDtypeStruct((Ch, 1), jnp.float32)),
        compiler_params=stats_cp,
        cost_estimate=pl.CostEstimate(
            flops=2 * N * Cin * Ch + 5 * N * Ch + 3 * N * Cin,
            transcendentals=0,
            bytes_accessed=4 * N * Cin + 4 * (Cin * Ch + 2 * Cin + 4 * Ch)),
    )(x, a0, s0, params["w0"])

    # Fold bn_1 + fc_0.bias analytically:
    #   net = W0@h0 + b0, mu1 = mean(net) = mu1_raw + b0, var1 = var(W0@h0)
    #   bn_1(net) = a1*(W0@h0) + (be1 - mu1_raw*a1)   -> b0 cancels entirely.
    mu1_raw = net_sum * inv_n
    var1 = jnp.maximum(net_sq * inv_n - mu1_raw * mu1_raw, 0.0)
    a1 = params["g1"] * jax.lax.rsqrt(var1 + EPS)              # (Ch, 1)
    s1f = params["be1"] - mu1_raw * a1                         # (Ch, 1)
    w0_eff = params["w0"] * a1                                 # a1 folded into fc_0 rows

    # fc_1 / shortcut / fc_c stacked into one weight; their biases merged.
    w_all = jnp.concatenate([params["w1"], params["ws"], params["wc"]], axis=1)
    bias_out = params["b1"] + params["bc"]                     # (Cout, 1)

    # ---- pass 3: apply everything tile-by-tile ----
    out = pl.pallas_call(
        _apply_kernel,
        grid=grid,
        in_specs=[x_spec, c_spec,
                  const_spec(a0), const_spec(s0),
                  const_spec(w0_eff), const_spec(s1f),
                  const_spec(w_all), const_spec(bias_out)],
        out_specs=pl.BlockSpec((1, Cout, TL), lambda b, l: (b, 0, l)),
        out_shape=jax.ShapeDtypeStruct((B, Cout, L), jnp.float32),
        compiler_params=apply_cp,
        cost_estimate=pl.CostEstimate(
            flops=2 * N * (Cin * Ch + (Ch + Cin + Cd) * Cout) + 6 * N * (Cin + Ch),
            transcendentals=0,
            bytes_accessed=4 * N * (Cin + Cd + Cout)),
    )(x, c, a0, s0, w0_eff, s1f, w_all, bias_out)

    return out


def make_params(key, c_dim, size_in, size_h, size_out, *, zero_fc1=True):
    """Weights stored in NCL-friendly layout: Conv1d(k=1) weight -> (Cout, Cin),
    per-channel params -> (C, 1)."""
    ks = jax.random.split(key, 9)
    p = {
        "g0": 1.0 + 0.1 * jax.random.normal(ks[0], (size_in, 1), jnp.float32),
        "be0": 0.1 * jax.random.normal(ks[1], (size_in, 1), jnp.float32),
        "g1": 1.0 + 0.1 * jax.random.normal(ks[2], (size_h, 1), jnp.float32),
        "be1": 0.1 * jax.random.normal(ks[3], (size_h, 1), jnp.float32),
        "w0": 0.1 * jax.random.normal(ks[4], (size_h, size_in), jnp.float32),
        "b0": 0.1 * jax.random.normal(ks[5], (size_h, 1), jnp.float32),
        # fc_1.weight is zero-initialised in the PyTorch module; keep that by
        # default, but allow a non-zero variant for a stronger numerical check.
        "w1": (jnp.zeros((size_out, size_h), jnp.float32) if zero_fc1
               else 0.05 * jax.random.normal(ks[6], (size_out, size_h), jnp.float32)),
        "b1": 0.1 * jax.random.normal(ks[7], (size_out, 1), jnp.float32),
        "wc": 0.1 * jax.random.normal(ks[8], (size_out, c_dim), jnp.float32),
        "bc": 0.05 * jnp.ones((size_out, 1), jnp.float32),
        # shortcut (size_in != size_out): Conv1d(size_in, size_out, 1, bias=False)
        "ws": 0.1 * jax.random.normal(jax.random.PRNGKey(123), (size_out, size_in),
                                      jnp.float32),
    }
    return p


def ref_forward(x, c, p):
    """Pure-JAX reference mirroring the PyTorch forward (training-mode BN),
    including fc_0's bias (which the kernel path folds away analytically)."""
    hp = jax.lax.Precision.HIGHEST

    def bn(v, g, b):  # v: (B, C, L); biased variance, eps=1e-5
        mu = v.mean(axis=(0, 2), keepdims=True)
        var = ((v - mu) ** 2).mean(axis=(0, 2), keepdims=True)
        return (v - mu) * jax.lax.rsqrt(var + EPS) * g.reshape(1, -1, 1) + b.reshape(1, -1, 1)

    def conv(v, w, b=None):  # w: (Cout, Cin), kernel_size=1
        y = jnp.einsum("oc,bcl->bol", w, v, precision=hp)
        if b is not None:
            y = y + b.reshape(1, -1, 1)
        return y

    net = conv(jax.nn.relu(bn(x, p["g0"], p["be0"])), p["w0"], p["b0"])
    dx = conv(jax.nn.relu(bn(net, p["g1"], p["be1"])), p["w1"], p["b1"])
    x_s = conv(x, p["ws"])
    return x_s + dx + conv(c, p["wc"], p["bc"])


if __name__ == "__main__":
    # Small but non-trivial: L = 384 tiles into 3 lane-dense blocks of 128,
    # grid = (2, 3), so the resident-accumulator stats path is exercised.
    B, L = 2, 384
    c_dim, size_in, size_h, size_out = 8, 16, 32, 24

    key = jax.random.PRNGKey(0)
    kx, kc, kp = jax.random.split(key, 3)
    x = jax.random.normal(kx, (B, size_in, L), jnp.float32)
    c = jax.random.normal(kc, (B, c_dim, L), jnp.float32)

    # 1) spec-faithful params (fc_1 weight zero-initialised, as in the module).
    params = make_params(kp, c_dim, size_in, size_h, size_out, zero_fc1=True)
    out = jax.block_until_ready(resnet_block_conv1d(x, c, params))
    ref = ref_forward(x, c, params)
    assert out.shape == (B, size_out, L)
    assert jnp.allclose(out, ref, atol=2e-4, rtol=2e-4), "mismatch vs reference (zero fc_1)"

    # 2) non-zero fc_1 weights to exercise the full bn_0/fc_0/bn_1/fc_1 path
    #    (this also validates the b0 / bn_1 analytic fold).
    params_nz = make_params(kp, c_dim, size_in, size_h, size_out, zero_fc1=False)
    out_nz = jax.block_until_ready(resnet_block_conv1d(x, c, params_nz))
    ref_nz = ref_forward(x, c, params_nz)
    assert jnp.allclose(out_nz, ref_nz, atol=2e-4, rtol=2e-4), "mismatch vs reference (non-zero fc_1)"

    print("KERNEL_OK")
</pallas_src>

<mosaic_0001>
module attributes {stable_mosaic.version = 11 : i64} {
  func.func @_x_stats_kernel(%arg0: i32, %arg1: i32, %arg2: memref<1x16x384xf32, #tpu.memory_space<vmem>>, %arg3: memref<16x1xf32, #tpu.memory_space<vmem>>, %arg4: memref<16x1xf32, #tpu.memory_space<vmem>>) attributes {dimension_semantics = [#tpu.dimension_semantics<arbitrary>, #tpu.dimension_semantics<arbitrary>], iteration_bounds = array<i64: 2, 1>, scalar_prefetch = 0 : i64, scratch_operands = 0 : i64, tpu.core_type = #tpu.core_type<tc>, window_params = [{transform_indices = @transform_0, window_bounds = array<i64: 1, 16, 384>}, {pipeline_mode = #tpu.pipeline_mode<synchronous>, transform_indices = @transform_1, window_bounds = array<i64: 16, 1>}, {pipeline_mode = #tpu.pipeline_mode<synchronous>, transform_indices = @transform_2, window_bounds = array<i64: 16, 1>}]} {
    %c0_i32 = arith.constant 0 : i32
    %0 = arith.cmpi eq, %arg0, %c0_i32 : i32
    %c0_i32_0 = arith.constant 0 : i32
    %1 = arith.cmpi eq, %arg1, %c0_i32_0 : i32
    %2 = arith.andi %0, %1 : i1
    %3 = arith.extui %2 : i1 to i32
    %c0_i32_1 = arith.constant 0 : i32
    %4 = arith.cmpi ne, %3, %c0_i32_1 : i32
    scf.if %4 {
      %cst_13 = arith.constant 0.000000e+00 : f32
      %18 = vector.broadcast %cst_13 : f32 to vector<16x1xf32>
      %c0_14 = arith.constant 0 : index
      %c0_15 = arith.constant 0 : index
      %19 = vector.load %arg3[%c0_14, %c0_15] : memref<16x1xf32, #tpu.memory_space<vmem>>, vector<16x1xf32>
      tpu.vector_store %arg3[%c0_14, %c0_15], %18 {strides = array<i32>} : memref<16x1xf32, #tpu.memory_space<vmem>>, vector<16x1xf32>,
      %cst_16 = arith.constant 0.000000e+00 : f32
      %20 = vector.broadcast %cst_16 : f32 to vector<16x1xf32>
      %c0_17 = arith.constant 0 : index
      %c0_18 = arith.constant 0 : index
      %21 = vector.load %arg4[%c0_17, %c0_18] : memref<16x1xf32, #tpu.memory_space<vmem>>, vector<16x1xf32>
      tpu.vector_store %arg4[%c0_17, %c0_18], %20 {strides = array<i32>} : memref<16x1xf32, #tpu.memory_space<vmem>>, vector<16x1xf32>,
    } else {
    }
    %c0 = arith.constant 0 : index
    %c0_2 = arith.constant 0 : index
    %c0_3 = arith.constant 0 : index
    %5 = vector.load %arg2[%c0, %c0_2, %c0_3] : memref<1x16x384xf32, #tpu.memory_space<vmem>>, vector<1x16x384xf32>
    %6 = vector.shape_cast %5 : vector<1x16x384xf32> to vector<16x384xf32>
    %c0_4 = arith.constant 0 : index
    %c0_5 = arith.constant 0 : index
    %7 = vector.load %arg3[%c0_4, %c0_5] : memref<16x1xf32, #tpu.memory_space<vmem>>, vector<16x1xf32>
    %cst = arith.constant dense<0.000000e+00> : vector<16xf32>
    %8 = vector.multi_reduction <add>, %6, %cst [1] : vector<16x384xf32> to vector<16xf32>
    %9 = vector.shape_cast %8 : vector<16xf32> to vector<16x1xf32>
    %10 = arith.addf %7, %9 : vector<16x1xf32>
    %c0_6 = arith.constant 0 : index
    %c0_7 = arith.constant 0 : index
    %11 = vector.load %arg3[%c0_6, %c0_7] : memref<16x1xf32, #tpu.memory_space<vmem>>, vector<16x1xf32>
    tpu.vector_store %arg3[%c0_6, %c0_7], %10 {strides = array<i32>} : memref<16x1xf32, #tpu.memory_space<vmem>>, vector<16x1xf32>,
    %c0_8 = arith.constant 0 : index
    %c0_9 = arith.constant 0 : index
    %12 = vector.load %arg4[%c0_8, %c0_9] : memref<16x1xf32, #tpu.memory_space<vmem>>, vector<16x1xf32>
    %13 = arith.mulf %6, %6 : vector<16x384xf32>
    %cst_10 = arith.constant dense<0.000000e+00> : vector<16xf32>
    %14 = vector.multi_reduction <add>, %13, %cst_10 [1] : vector<16x384xf32> to vector<16xf32>
    %15 = vector.shape_cast %14 : vector<16xf32> to vector<16x1xf32>
    %16 = arith.addf %12, %15 : vector<16x1xf32>
    %c0_11 = arith.constant 0 : index
    %c0_12 = arith.constant 0 : index
    %17 = vector.load %arg4[%c0_11, %c0_12] : memref<16x1xf32, #tpu.memory_space<vmem>>, vector<16x1xf32>
    tpu.vector_store %arg4[%c0_11, %c0_12], %16 {strides = array<i32>} : memref<16x1xf32, #tpu.memory_space<vmem>>, vector<16x1xf32>,
    return
  }
  func.func @transform_0(%arg0: i32, %arg1: i32) -> (i32, i32, i32) {
    %c0_i32 = arith.constant 0 : i32
    %c0_i32_0 = arith.constant 0 : i32
    return %arg0, %c0_i32, %arg1 : i32, i32, i32
  }
  func.func @transform_1(%arg0: i32, %arg1: i32) -> (i32, i32) {
    %c0_i32 = arith.constant 0 : i32
    %c0_i32_0 = arith.constant 0 : i32
    %c0_i32_1 = arith.constant 0 : i32
    return %c0_i32, %c0_i32_0 : i32, i32
  }
  func.func @transform_2(%arg0: i32, %arg1: i32) -> (i32, i32) {
    %c0_i32 = arith.constant 0 : i32
    %c0_i32_0 = arith.constant 0 : i32
    %c0_i32_1 = arith.constant 0 : i32
    return %c0_i32, %c0_i32_0 : i32, i32
  }
}

</mosaic_0001>

<bundles_post_ra>
// kernel: tpu_custom_call.1
= control target key start
LH: loop header
LB: loop body
LE: loop exit
PB: predicated region body
PF: predicated region fallthrough
CT: control target
= control target key end

     0   :  { %8 = vsyncpa [#allocation3], 0  ;;  %s594_s0 = inlined_call_operand.hbm [shape: f32[2,16,384], index: 0, kind: input, shape index: {}]   ;;  %s595_s1 = inlined_call_operand.vmem [shape: f32[16,1], index: 1, kind: output, shape index: {0}]   ;;  %s596_s2 = inlined_call_operand.vmem [shape: f32[16,1], index: 2, kind: output, shape index: {1}]  }
   0x1   :  { %10 = vsyncpa [#allocation3 + $0x1], 0  ;;  %s444_s9 = smov 0   ;;  %s446_s10 = smov 0  }
   0x2   :  { %s448_s11 = smov 0   ;;  %s450_s12 = smov 0  }
   0x3   :  { %s452_s13 = smov 0   ;;  %s454_s14 = smov 0  }
   0x4 LB: > { %s273_s15 = sadd.s32 4294967295, %s423_s14   ;;  %s28_s16 = sadd.s32 1, %s419_s13  ;;  %s423_s14 = sphi %s454_s14, %s16_s14   ;;  %s419_s13 = sphi %s452_s13, %s603_s13   ;;  %s415_s12 = sphi %s450_s12, %s602_s12   ;;  %s411_s11 = sphi %s448_s11, %s601_s11   ;;  %s407_s10 = sphi %s446_s10, %s600_s10   ;;  %s403_s9 = sphi %s444_s9, %s599_s9  }
   0x5   : > { %p30_p0 = scmp.ge.s32.totalorder %s28_s16, 2  ;;  %s37_s17 = sadd.s32 1, %s411_s11 }
   0x6   : > { %p44_p1 = scmp.ne.s32.totalorder %s411_s11, %s407_s10  ;;  %p45_p2 = scmp.eq.s32.totalorder %s423_s14, 0 }
   0x7   : > { %s605_s16 = smov (%p30_p0, %s28_s16), 0  ;;  %p50_p4 = scmp.ne.s32.totalorder %s407_s10, %s403_s9 }
   0x8   : > { %p46_p3 = por %p45_p2, %p44_p1  ;;  %s32_s18 = ssub.s32 %s419_s13, %s605_s16 }
   0x9   : > { %p51_p5 = scmp.eq.s32.totalorder %s273_s15, 0  ;;  %p35_p6 = scmp.eq.s32.totalorder %s32_s18, 0 }
   0xa   : > { %p291_p8 = scmp.lt.s32.totalorder %s423_s14, 2  ;;  %s116_s21 = sand.u32 1, %s411_s11  }
   0xb   : > { %p483_p7 = por %p51_p5, %p50_p4  ;;  %s283_s22 = smul.u32 768, %s419_s13 }
   0xc   : > { %s489_s20 = scalar_select %p35_p6, %s411_s11, %s37_s17  }
   0xd   : > { %s282_s23 = smul.u32 48, %s116_s21  ;;  %s496_s26 = scalar_lea.hbm %s594_s0, %s283_s22 }
   0xe   : > { %p498_p9 = pnand %p291_p8, %p46_p3  ;;  %s504_s30 = scalar_lea.sflag [#allocation3], %s116_s21 }
   0xf   : > { %s120_s28 = scalar_lea.vmem [#allocation2], %s282_s23  ;;  %s343_s3 = scalar_lea.hbm %s496_s26, 768 }
  0x10   : > { %s129_s29 = sshll.u32 %s120_s28, 4  ;;  %p344_p10 = scmp.ne.s32.totalorder %s496_s26, %s343_s3  ;;  %s502_s29 = int_to_ptr.vmem [resolvable:$true] %s129_s29 }
  0x11   : > { %p345_p11 = pneg %p498_p9  ;;  %s348_s6 = scalar_lea.hbm %s594_s0, 1536 }
  0x12   : > { %p349_p0 = scmp.lt.u32.totalorder %s496_s26, %s594_s0  ;;  %p350_p1 = scmp.lt.u32.totalorder %s348_s6, %s343_s3 }
  0x13   : > { %p346_p12 = pnand %p345_p11, %p344_p10  ;;  %p352_p3 = scmp.lt.u32.totalorder %s343_s3, %s496_s26 }
  0x14   : > { %p351_p2 = por %p350_p1, %p349_p0 }
  0x15   : > { %p347_p13 = pneg %p346_p12 }
  0x16   : > { %p353_p4 = por %p352_p3, %p351_p2 }
  0x18   : > { %p354_p5 = pnand %p353_p4, %p347_p13 }
  0x1a   : > { %357 = shalt.err (!%p354_p5)
}
  0x1b   : > { %s358_s9 = scalar_lea.vmem %s502_s29, 768  ;;  %s425_s15 = smov [#allocation2]  }
  0x1c   : > { %p359_p6 = scmp.ne.s32.totalorder %s502_s29, %s358_s9  ;;  %s363_s17 = sshll.u32 %s425_s15, 4  ;;  %s364_s17 = int_to_ptr.vmem [resolvable:$false] %s363_s17 }
  0x1d   : > { %s365_s18 = scalar_lea.vmem %s364_s17, 1536  ;;  %p366_p12 = scmp.lt.s32.totalorder %s502_s29, %s364_s17 }
  0x1e   : > { %p361_p8 = pnand %p359_p6, %p345_p11  ;;  %p367_p0 = scmp.lt.s32.totalorder %s365_s18, %s358_s9 }
  0x20   : > { %p362_p10 = pneg %p361_p8  ;;  %p368_p1 = por %p367_p0, %p366_p12 }
  0x22   : > { %p369_p2 = pnand %p368_p1, %p362_p10 }
  0x24   : > { %372 = shalt.err (!%p369_p2)
}
  0x25   : > { %s426_s21 = smov 384   ;;  %s427_s22 = smov 24  }
  0x26   : > { %290 = dma.hbm_to_vmem [thread:$0]  (!%p498_p9), %s496_s26, 768, %s502_s29, %s504_s30, %s426_s21, %s426_s21, %s427_s22  }
  0x27   : > { %p277_p11 = scmp.ge.s32.totalorder %s423_s14, 1  ;;  %p137_p13 = scmp.lt.s32.totalorder %s423_s14, 3 }
  0x29   : > { %p138_p3 = pnand %p277_p11, %p137_p13 }
  0x2a   : > { %s143_s23 = sand.u32 (!%p138_p3), 1, %s407_s10  }
  0x2b   : > { %141 = sbr.rel (%p138_p3) target bundleno = 216 (0xd8), region = 24  ;;  %s144_s25 = scalar_lea.sflag (!%p138_p3), [#allocation3], %s143_s23 }
  0x2c   : > { %s284_s24 = smul.u32 (!%p138_p3), 48, %s143_s23 }
  0x2e   : > { %s147_s28 = scalar_lea.vmem (!%p138_p3), [#allocation2], %s284_s24 }
  0x32   : > { %398 = dma.done.wait (%p483_p7), %s144_s25, 768  }
  0x33   : > { %400 = vsyncadd (%p483_p7), %s144_s25, 4294966528  ;;  %p164_p4 = scmp.eq.s32.totalorder %s415_s12, 0 }
  0x34   : > { %vm170_vm0 = vcmask (%p164_p4), 7168   ;;  %v428_v0 = vmov (%p164_p4), 0.0  }
  0x35   : > { %169 = sbr.rel (!%p164_p4) target bundleno = 60 (0x3c), region = 32  ;;  %171 = vst.msk [vmem:[%s595_s1] sm:$0xff] (%p164_p4), %vm170_vm0, %v428_v0  ;;  %172 = vst.msk [vmem:[%s595_s1 + $0x8] sm:$0xff] (%p164_p4), %vm170_vm0, %v428_v0 }
  0x36   : > { %173 = vst.msk [vmem:[%s596_s2] sm:$0xff] (%p164_p4), %vm170_vm0, %v428_v0  ;;  %174 = vst.msk [vmem:[%s596_s2 + $0x8] sm:$0xff] (%p164_p4), %vm170_vm0, %v428_v0 }
  0x3c PF: > { %v175_v1 = vld [vmem:[%s147_s28] sm:$0xff]  ;;  %v176_v2 = vld [vmem:[%s147_s28 + $0x8] sm:$0xff]  ;;  %v177_v3 = vld [vmem:[%s147_s28 + $0x10] sm:$0xff]  ;;  %vm193_vm1 = vcmask 7168  }
  0x3d   : > { %v198_v4 = vmul.f32 %v175_v1, %v175_v1  ;;  %v199_v5 = vmul.f32 %v176_v2, %v176_v2  ;;  %v200_v6 = vmul.f32 %v177_v3, %v177_v3  ;;  %v183_v7 = vadd.f32 %v176_v2, %v175_v1  ;;  %v178_v8 = vld [vmem:[%s147_s28 + $0x18] sm:$0xff]  ;;  %v179_v9 = vld [vmem:[%s147_s28 + $0x20] sm:$0xff]  ;;  %v180_v10 = vld [vmem:[%s147_s28 + $0x28] sm:$0xff] }
  0x3e   : > { %v201_v11 = vmul.f32 %v178_v8, %v178_v8  ;;  %v202_v12 = vmul.f32 %v179_v9, %v179_v9  ;;  %v187_v13 = vadd.f32 %v179_v9, %v178_v8  ;;  %v203_v16 = vmul.f32 %v180_v10, %v180_v10  ;;  %v181_v21 = vld [vmem:[%s595_s1] sm:$0xff]  ;;  %v182_v26 = vld [vmem:[%s595_s1 + $0x8] sm:$0xff] }
  0x3f   : > { %v204_v14 = vadd.f32 %v199_v5, %v198_v4  ;;  %v184_v15 = vadd.f32 %v183_v7, %v177_v3  ;;  %v196_v22 = vld [vmem:[%s596_s2] sm:$0xff]  ;;  %v197_v28 = vld [vmem:[%s596_s2 + $0x8] sm:$0xff] }
  0x40   : > { %v208_v17 = vadd.f32 %v202_v12, %v201_v11  ;;  %v188_v19 = vadd.f32 %v187_v13, %v180_v10 }
  0x41   : > { %v205_v18 = vadd.f32 %v204_v14, %v200_v6  ;;  %185 = vadd.xlane.f32.xlu0 %v184_v15 }
  0x42   : > { %v209_v20 = vadd.f32 %v208_v17, %v203_v16 }
  0x43   : > { %206 = vadd.xlane.f32.xlu1 %v205_v18 }
  0x45   : > { %189 = vadd.xlane.f32.xlu0 %v188_v19 }
  0x47   : > { %210 = vadd.xlane.f32.xlu1 %v209_v20 }
  0xce   : > { %v186_v23 = vpop.xlane.xlu0 %185 }
  0xcf   : > { %v191_v24 = vadd.f32 %v186_v23, %v181_v21 }
  0xd0   : > { %v207_v25 = vpop.xlane.xlu1 %206 }
  0xd1   : > { %v212_v27 = vadd.f32 %v207_v25, %v196_v22  ;;  %194 = vst.msk [vmem:[%s595_s1] sm:$0xff] %vm193_vm1, %v191_v24 }
  0xd2   : > { %v190_v29 = vpop.xlane.xlu0 %189 }
  0xd3   : > { %214 = vst.msk [vmem:[%s596_s2] sm:$0xff] %vm193_vm1, %v212_v27  ;;  %v192_v30 = vadd.f32 %v190_v29, %v182_v26 }
  0xd4   : > { %v211_v31 = vpop.xlane.xlu1 %210 }
  0xd5   : > { %v213_v32 = vadd.f32 %v211_v31, %v197_v28  ;;  %195 = vst.msk [vmem:[%s595_s1 + $0x8] sm:$0xff] %vm193_vm1, %v192_v30 }
  0xd7   : > { %215 = vst.msk [vmem:[%s596_s2 + $0x8] sm:$0xff] %vm193_vm1, %v213_v32 }
  0xd8 PF: > { %s16_s14 = sadd.s32 1, %s423_s14   ;;  %s599_s9 = smov %s407_s10 }
  0xd9   : > { %p13_p7 = scmp.ge.s32.totalorder %s16_s14, 4   ;;  %s600_s10 = smov %s411_s11 }
  0xda   : > { %s601_s11 = smov %s489_s20  ;;  %s602_s12 = smov %s419_s13 }
  0xdb   : > { %s603_s13 = smov %s605_s16  ;;  %15 = sbr.rel (!%p13_p7) target bundleno = 4 (0x4), region = 72 }
  0xe2   :  { %233 = vsyncpa [#allocation3], 1 }
  0xe3   :  { %235 = vsyncpa [#allocation3 + $0x1], 1 }

</bundles_post_ra>
